<compile_context>
chip_gen: v7x
topology: tpu7x:2x2x1
jax: 0.10.0
libtpu: 0.0.40
codegen_flags: <defaults>
</compile_context>

<pallas_src>
import jax
import jax.numpy as jnp
from jax.experimental import pallas as pl
from jax.experimental.pallas import tpu as pltpu

NUM_CLASSES = 7
NUM_UNIT = 128
MIDDLE = 64

# lane-dense padded widths (multiples of 128); do NOT shrink on v5e either
MIDDLE_PAD = 128
OUT_PAD = 128

BN_EPS = 1e-5


def _bn_train_folded(h, gamma, beta):
    """Training-mode BatchNorm1d folded to a single scale/shift FMA.

    Single-pass statistics: s1 = E[h], s2 = E[h^2], var = max(s2 - s1^2, 0)
    (biased variance, eps=1e-5). rsqrt goes to the EUP slot. Padded lanes stay
    exactly 0 because their gamma is 0 (scale=0, shift=0).
    """
    s1 = jnp.mean(h, axis=0, keepdims=True)
    s2 = jnp.mean(h * h, axis=0, keepdims=True)
    var = jnp.maximum(s2 - s1 * s1, 0.0)
    scale = gamma * jax.lax.rsqrt(var + BN_EPS)      # (1, F)
    shift = beta - s1 * scale                        # (1, F)
    return h * scale + shift


def res_classifier_kernel(x_ref, w_ref, v_ref, o_ref):
    # v_ref rows: [g1, be1, g2, be2, b3]  (all within one (8,128) tile)
    g1, be1 = v_ref[0:1, :], v_ref[1:2, :]
    g2, be2 = v_ref[2:3, :], v_ref[3:4, :]
    b3 = v_ref[4:5, :]

    x = x_ref[...]

    # fc1: (B,128) @ (128,128)  bf16 operands, f32 accumulation.
    # fc1/fc2 biases dropped: cancelled by train-mode BN mean subtraction.
    h = jnp.dot(x.astype(jnp.bfloat16), w_ref[0],
                preferred_element_type=jnp.float32)
    h = _bn_train_folded(h, g1, be1)
    h = jnp.maximum(h, 0.0)

    # fc2
    h = jnp.dot(h.astype(jnp.bfloat16), w_ref[1],
                preferred_element_type=jnp.float32)
    h = _bn_train_folded(h, g2, be2)
    h = jnp.maximum(h, 0.0)

    # fc3 + bias, lane-dense (B,128) store; wrapper slices [:, :7]
    out = jnp.dot(h.astype(jnp.bfloat16), w_ref[2],
                  preferred_element_type=jnp.float32) + b3
    o_ref[...] = out.astype(o_ref.dtype)


def pack_params_for_kernel(p):
    """Pack logical params into 2 lane-dense kernel operands.

    - w: (3, 128, 128) bf16 — [w1, w2, w3] zero-padded to 128x128 each.
    - vecs: (5, 128) f32 — [g1, be1, g2, be2, b3] zero-padded to 128 lanes.
    Padded output columns of fc1/fc2 are 0 and their gamma is 0, so padded
    lanes stay exactly 0 through BN/ReLU; padded rows/cols of w3/b3 are 0 so
    output columns >= NUM_CLASSES are 0 and get sliced off in the wrapper.
    """
    pad_m = MIDDLE_PAD - MIDDLE
    pad_c = OUT_PAD - NUM_CLASSES

    w1 = jnp.pad(p["w1"], ((0, 0), (0, pad_m)))          # (128, 128)
    w2 = jnp.pad(p["w2"], ((0, pad_m), (0, pad_m)))       # (128, 128)
    w3 = jnp.pad(p["w3"], ((0, pad_m), (0, pad_c)))       # (128, 128)
    w = jnp.stack([w1, w2, w3], axis=0).astype(jnp.bfloat16)   # (3,128,128)

    vecs = jnp.concatenate([
        jnp.pad(p["g1"], ((0, 0), (0, pad_m))),
        jnp.pad(p["be1"], ((0, 0), (0, pad_m))),
        jnp.pad(p["g2"], ((0, 0), (0, pad_m))),
        jnp.pad(p["be2"], ((0, 0), (0, pad_m))),
        jnp.pad(p["b3"], ((0, 0), (0, pad_c))),
    ], axis=0).astype(jnp.float32)                        # (5, 128)

    return {"w": w, "vecs": vecs}


def res_classifier_forward(x, kparams):
    """x: (B, NUM_UNIT) f32; kparams: packed kernel params. Returns (B, 7)."""
    B = x.shape[0]
    vmem = pl.BlockSpec(memory_space=pltpu.MemorySpace.VMEM)
    out_padded = pl.pallas_call(
        res_classifier_kernel,
        out_shape=jax.ShapeDtypeStruct((B, OUT_PAD), jnp.float32),
        in_specs=[vmem, vmem, vmem],
        out_specs=vmem,
    )(x, kparams["w"], kparams["vecs"])
    return out_padded[:, :NUM_CLASSES]


def init_params(key):
    """Deterministic synthetic params with the PyTorch module's logical shapes.

    PyTorch Linear weight is (out, in); we store the transpose (in, out) so the
    kernel computes x @ W directly. b1/b2 are kept here (and in the reference)
    to mirror the module; the kernel omits them (cancelled by train-mode BN).
    """
    ks = jax.random.split(key, 6)

    def linear(kw, kb, fan_in, fan_out):
        bound = 1.0 / jnp.sqrt(fan_in)
        w = jax.random.uniform(kw, (fan_in, fan_out), jnp.float32, -bound, bound)
        b = jax.random.uniform(kb, (1, fan_out), jnp.float32, -bound, bound)
        return w, b

    w1, b1 = linear(ks[0], ks[1], NUM_UNIT, MIDDLE)
    w2, b2 = linear(ks[2], ks[3], MIDDLE, MIDDLE)
    w3, b3 = linear(ks[4], ks[5], MIDDLE, NUM_CLASSES)

    return {
        "w1": w1, "b1": b1,
        "g1": jnp.ones((1, MIDDLE), jnp.float32),
        "be1": jnp.zeros((1, MIDDLE), jnp.float32),
        "w2": w2, "b2": b2,
        "g2": jnp.ones((1, MIDDLE), jnp.float32),
        "be2": jnp.zeros((1, MIDDLE), jnp.float32),
        "w3": w3, "b3": b3,
    }


def reference_forward(x, p):
    """Full PyTorch train-mode semantics reference (f32, keeps fc1/fc2 biases)."""
    def bn(h, gamma, beta):
        mu = jnp.mean(h, axis=0, keepdims=True)
        var = jnp.mean((h - mu) * (h - mu), axis=0, keepdims=True)
        return (h - mu) * jax.lax.rsqrt(var + BN_EPS) * gamma + beta

    h = x @ p["w1"] + p["b1"]
    h = jnp.maximum(bn(h, p["g1"], p["be1"]), 0.0)
    h = h @ p["w2"] + p["b2"]
    h = jnp.maximum(bn(h, p["g2"], p["be2"]), 0.0)
    return h @ p["w3"] + p["b3"]


if __name__ == "__main__":
    key = jax.random.PRNGKey(0)
    k_x, k_p = jax.random.split(key)

    B = 128  # >1 required for meaningful BN batch statistics; fills sublanes
    x = jax.random.normal(k_x, (B, NUM_UNIT), jnp.float32)
    params = init_params(k_p)
    kparams = pack_params_for_kernel(params)   # packed once, device-resident

    out = res_classifier_forward(x, kparams)
    out = jax.block_until_ready(out)

    ref = reference_forward(x, params)
    assert out.shape == (B, NUM_CLASSES)
    # bf16 matmul operands (f32 accumulation) -> relaxed tolerance vs f32 ref.
    assert jnp.allclose(out, ref, atol=5e-2, rtol=5e-2), "mismatch vs. JAX reference"

    # TODO(synk): training-mode BN running_mean/running_var updates are not
    # produced (forward output only), matching a forward-only use of train().
    print("KERNEL_OK")
</pallas_src>

<mosaic_0001>
module attributes {stable_mosaic.version = 11 : i64} {
  func.func @res_classifier_kernel(%arg0: memref<128x128xf32, #tpu.memory_space<vmem>>, %arg1: memref<3x128x128xbf16, #tpu.memory_space<vmem>>, %arg2: memref<5x128xf32, #tpu.memory_space<vmem>>, %arg3: memref<128x128xf32, #tpu.memory_space<vmem>>) attributes {dimension_semantics = [], scalar_prefetch = 0 : i64, scratch_operands = 0 : i64, tpu.core_type = #tpu.core_type<tc>} {
    %c0 = arith.constant 0 : index
    %c0_0 = arith.constant 0 : index
    %0 = vector.load %arg2[%c0, %c0_0] : memref<5x128xf32, #tpu.memory_space<vmem>>, vector<1x128xf32>
    %c1 = arith.constant 1 : index
    %c0_1 = arith.constant 0 : index
    %1 = vector.load %arg2[%c1, %c0_1] : memref<5x128xf32, #tpu.memory_space<vmem>>, vector<1x128xf32>
    %c2 = arith.constant 2 : index
    %c0_2 = arith.constant 0 : index
    %2 = vector.load %arg2[%c2, %c0_2] : memref<5x128xf32, #tpu.memory_space<vmem>>, vector<1x128xf32>
    %c3 = arith.constant 3 : index
    %c0_3 = arith.constant 0 : index
    %3 = vector.load %arg2[%c3, %c0_3] : memref<5x128xf32, #tpu.memory_space<vmem>>, vector<1x128xf32>
    %c4 = arith.constant 4 : index
    %c0_4 = arith.constant 0 : index
    %4 = vector.load %arg2[%c4, %c0_4] : memref<5x128xf32, #tpu.memory_space<vmem>>, vector<1x128xf32>
    %c0_5 = arith.constant 0 : index
    %c0_6 = arith.constant 0 : index
    %5 = vector.load %arg0[%c0_5, %c0_6] : memref<128x128xf32, #tpu.memory_space<vmem>>, vector<128x128xf32>
    %6 = arith.truncf %5 : vector<128x128xf32> to vector<128x128xbf16>
    %c0_7 = arith.constant 0 : index
    %c0_8 = arith.constant 0 : index
    %c0_9 = arith.constant 0 : index
    %7 = vector.load %arg1[%c0_7, %c0_8, %c0_9] : memref<3x128x128xbf16, #tpu.memory_space<vmem>>, vector<1x128x128xbf16>
    %8 = vector.shape_cast %7 : vector<1x128x128xbf16> to vector<128x128xbf16>
    %cst = arith.constant dense<0.000000e+00> : vector<128x128xf32>
    %9 = tpu.matmul %6, %8, %cst {dimension_numbers = #tpu.dot_dimension_numbers<[1], [0], [0], [1], [0, 0, 1, 1], [], []>} : vector<128x128xbf16>, vector<128x128xbf16>, vector<128x128xf32> -> vector<128x128xf32>
    %cst_10 = arith.constant dense<0.000000e+00> : vector<128xf32>
    %10 = vector.multi_reduction <add>, %9, %cst_10 [0] : vector<128x128xf32> to vector<128xf32>
    %11 = vector.shape_cast %10 : vector<128xf32> to vector<1x128xf32>
    %cst_11 = arith.constant 1.280000e+02 : f32
    %12 = vector.broadcast %cst_11 : f32 to vector<1x128xf32>
    %13 = arith.divf %11, %12 : vector<1x128xf32>
    %14 = arith.mulf %9, %9 : vector<128x128xf32>
    %cst_12 = arith.constant dense<0.000000e+00> : vector<128xf32>
    %15 = vector.multi_reduction <add>, %14, %cst_12 [0] : vector<128x128xf32> to vector<128xf32>
    %16 = vector.shape_cast %15 : vector<128xf32> to vector<1x128xf32>
    %cst_13 = arith.constant 1.280000e+02 : f32
    %17 = vector.broadcast %cst_13 : f32 to vector<1x128xf32>
    %18 = arith.divf %16, %17 : vector<1x128xf32>
    %19 = arith.mulf %13, %13 : vector<1x128xf32>
    %20 = arith.subf %18, %19 : vector<1x128xf32>
    %cst_14 = arith.constant 0.000000e+00 : f32
    %21 = vector.broadcast %cst_14 : f32 to vector<1x128xf32>
    %22 = arith.maximumf %20, %21 : vector<1x128xf32>
    %cst_15 = arith.constant 9.99999974E-6 : f32
    %23 = vector.broadcast %cst_15 : f32 to vector<1x128xf32>
    %24 = arith.addf %22, %23 : vector<1x128xf32>
    %25 = math.rsqrt %24 : vector<1x128xf32>
    %26 = arith.mulf %0, %25 : vector<1x128xf32>
    %27 = arith.mulf %13, %26 : vector<1x128xf32>
    %28 = arith.subf %1, %27 : vector<1x128xf32>
    %29 = vector.broadcast %26 : vector<1x128xf32> to vector<128x128xf32>
    %30 = arith.mulf %9, %29 : vector<128x128xf32>
    %31 = vector.broadcast %28 : vector<1x128xf32> to vector<128x128xf32>
    %32 = arith.addf %30, %31 : vector<128x128xf32>
    %cst_16 = arith.constant 0.000000e+00 : f32
    %33 = vector.broadcast %cst_16 : f32 to vector<128x128xf32>
    %34 = arith.maximumf %32, %33 : vector<128x128xf32>
    %35 = arith.truncf %34 : vector<128x128xf32> to vector<128x128xbf16>
    %c1_17 = arith.constant 1 : index
    %c0_18 = arith.constant 0 : index
    %c0_19 = arith.constant 0 : index
    %36 = vector.load %arg1[%c1_17, %c0_18, %c0_19] : memref<3x128x128xbf16, #tpu.memory_space<vmem>>, vector<1x128x128xbf16>
    %37 = vector.shape_cast %36 : vector<1x128x128xbf16> to vector<128x128xbf16>
    %cst_20 = arith.constant dense<0.000000e+00> : vector<128x128xf32>
    %38 = tpu.matmul %35, %37, %cst_20 {dimension_numbers = #tpu.dot_dimension_numbers<[1], [0], [0], [1], [0, 0, 1, 1], [], []>} : vector<128x128xbf16>, vector<128x128xbf16>, vector<128x128xf32> -> vector<128x128xf32>
    %cst_21 = arith.constant dense<0.000000e+00> : vector<128xf32>
    %39 = vector.multi_reduction <add>, %38, %cst_21 [0] : vector<128x128xf32> to vector<128xf32>
    %40 = vector.shape_cast %39 : vector<128xf32> to vector<1x128xf32>
    %cst_22 = arith.constant 1.280000e+02 : f32
    %41 = vector.broadcast %cst_22 : f32 to vector<1x128xf32>
    %42 = arith.divf %40, %41 : vector<1x128xf32>
    %43 = arith.mulf %38, %38 : vector<128x128xf32>
    %cst_23 = arith.constant dense<0.000000e+00> : vector<128xf32>
    %44 = vector.multi_reduction <add>, %43, %cst_23 [0] : vector<128x128xf32> to vector<128xf32>
    %45 = vector.shape_cast %44 : vector<128xf32> to vector<1x128xf32>
    %cst_24 = arith.constant 1.280000e+02 : f32
    %46 = vector.broadcast %cst_24 : f32 to vector<1x128xf32>
    %47 = arith.divf %45, %46 : vector<1x128xf32>
    %48 = arith.mulf %42, %42 : vector<1x128xf32>
    %49 = arith.subf %47, %48 : vector<1x128xf32>
    %cst_25 = arith.constant 0.000000e+00 : f32
    %50 = vector.broadcast %cst_25 : f32 to vector<1x128xf32>
    %51 = arith.maximumf %49, %50 : vector<1x128xf32>
    %cst_26 = arith.constant 9.99999974E-6 : f32
    %52 = vector.broadcast %cst_26 : f32 to vector<1x128xf32>
    %53 = arith.addf %51, %52 : vector<1x128xf32>
    %54 = math.rsqrt %53 : vector<1x128xf32>
    %55 = arith.mulf %2, %54 : vector<1x128xf32>
    %56 = arith.mulf %42, %55 : vector<1x128xf32>
    %57 = arith.subf %3, %56 : vector<1x128xf32>
    %58 = vector.broadcast %55 : vector<1x128xf32> to vector<128x128xf32>
    %59 = arith.mulf %38, %58 : vector<128x128xf32>
    %60 = vector.broadcast %57 : vector<1x128xf32> to vector<128x128xf32>
    %61 = arith.addf %59, %60 : vector<128x128xf32>
    %cst_27 = arith.constant 0.000000e+00 : f32
    %62 = vector.broadcast %cst_27 : f32 to vector<128x128xf32>
    %63 = arith.maximumf %61, %62 : vector<128x128xf32>
    %64 = arith.truncf %63 : vector<128x128xf32> to vector<128x128xbf16>
    %c2_28 = arith.constant 2 : index
    %c0_29 = arith.constant 0 : index
    %c0_30 = arith.constant 0 : index
    %65 = vector.load %arg1[%c2_28, %c0_29, %c0_30] : memref<3x128x128xbf16, #tpu.memory_space<vmem>>, vector<1x128x128xbf16>
    %66 = vector.shape_cast %65 : vector<1x128x128xbf16> to vector<128x128xbf16>
    %cst_31 = arith.constant dense<0.000000e+00> : vector<128x128xf32>
    %67 = tpu.matmul %64, %66, %cst_31 {dimension_numbers = #tpu.dot_dimension_numbers<[1], [0], [0], [1], [0, 0, 1, 1], [], []>} : vector<128x128xbf16>, vector<128x128xbf16>, vector<128x128xf32> -> vector<128x128xf32>
    %68 = vector.broadcast %4 : vector<1x128xf32> to vector<128x128xf32>
    %69 = arith.addf %67, %68 : vector<128x128xf32>
    %c0_32 = arith.constant 0 : index
    %c0_33 = arith.constant 0 : index
    %70 = vector.load %arg3[%c0_32, %c0_33] : memref<128x128xf32, #tpu.memory_space<vmem>>, vector<128x128xf32>
    tpu.vector_store %arg3[%c0_32, %c0_33], %69 {strides = array<i32>} : memref<128x128xf32, #tpu.memory_space<vmem>>, vector<128x128xf32>,
    return
  }
}

</mosaic_0001>

<bundles_post_ra>
// kernel: tpu_custom_call.1
= control target key start
LH: loop header
LB: loop body
LE: loop exit
PB: predicated region body
PF: predicated region fallthrough
CT: control target
= control target key end

     0   :  { %8 = vsyncpa [#allocation3], 0  ;;  %s1431_s0 = inlined_call_operand.hbm [shape: f32[128,128], index: 0, kind: input, shape index: {}]   ;;  %s1432_s1 = inlined_call_operand.hbm [shape: bf16[3,128,128], index: 1, kind: input, shape index: {}]   ;;  %s1433_s2 = inlined_call_operand.hbm [shape: f32[5,128], index: 2, kind: input, shape index: {}]   ;;  %s1434_s3 = inlined_call_operand.hbm [shape: f32[128,128], index: 3, kind: output, shape index: {}]  }
   0x1   :  { %9 = vsyncpa [#allocation6], 0 }
   0x2   :  { %10 = vsyncpa [#allocation4], 0  ;;  %s1187_s12 = smov [#allocation5]   ;;  %s1093_s16 = scalar_lea.hbm %s1432_s1, 3072 }
   0x3   :  { %s28_s13 = sshll.u32 %s1187_s12, 4  ;;  %p1094_p0 = scmp.ne.s32.totalorder %s1432_s1, %s1093_s16  ;;  %s29_s13 = int_to_ptr.vmem [resolvable:$true] %s28_s13 }
   0x4   :  { %p1097_p1 = scmp.lt.u32.totalorder %s1093_s16, %s1432_s1 }
   0x6   :  { %p1099_p2 = pnand %p1097_p1, %p1094_p0 }
   0x8   :  { %1102 = shalt.err (!%p1099_p2)
}
   0x9   :  { %s1103_s21 = scalar_lea.vmem %s29_s13, 3072  ;;  %p1108_p4 = scmp.lt.s32.totalorder %s29_s13, %s29_s13 }
   0xa   :  { %p1104_p3 = scmp.ne.s32.totalorder %s29_s13, %s1103_s21  ;;  %p1109_p5 = scmp.lt.s32.totalorder %s1103_s21, %s1103_s21 }
   0xc   :  { %p1110_p6 = por %p1109_p5, %p1108_p4 }
   0xe   :  { %p1111_p7 = pnand %p1110_p6, %p1104_p3 }
  0x10   :  { %1114 = shalt.err (!%p1111_p7)
}
  0x11   :  { %s1188_s22 = smov 64   ;;  %s1189_s23 = smov 4  }
  0x12   :  { %34 = dma.hbm_to_vmem [thread:$0]  %s1432_s1, 3072, %s29_s13, [#allocation6], %s1188_s22, %s1188_s22, %s1189_s23  }
  0x13   :  { %s1190_s26 = smov [#allocation2]   ;;  %s1115_s30 = scalar_lea.hbm %s1431_s0, 2048 }
  0x14   :  { %s16_s27 = sshll.u32 %s1190_s26, 4  ;;  %p1116_p8 = scmp.ne.s32.totalorder %s1431_s0, %s1115_s30  ;;  %s17_s27 = int_to_ptr.vmem [resolvable:$true] %s16_s27 }
  0x15   :  { %p1119_p9 = scmp.lt.u32.totalorder %s1115_s30, %s1431_s0 }
  0x17   :  { %p1121_p10 = pnand %p1119_p9, %p1116_p8 }
  0x19   :  { %1124 = shalt.err (!%p1121_p10)
}
  0x1a   :  { %s1125_s8 = scalar_lea.vmem %s17_s27, 2048  ;;  %p1130_p12 = scmp.lt.s32.totalorder %s17_s27, %s17_s27 }
  0x1b   :  { %p1126_p11 = scmp.ne.s32.totalorder %s17_s27, %s1125_s8  ;;  %p1131_p13 = scmp.lt.s32.totalorder %s1125_s8, %s1125_s8 }
  0x1d   :  { %p1132_p0 = por %p1131_p13, %p1130_p12 }
  0x1f   :  { %p1133_p1 = pnand %p1132_p0, %p1126_p11 }
  0x21   :  { %1136 = shalt.err (!%p1133_p1)
}
  0x22   :  { %s1191_s1 = smov 128   ;;  %s1192_s9 = smov 8  }
  0x23   :  { %22 = dma.hbm_to_vmem [thread:$0]  %s1431_s0, 2048, %s17_s27, [#allocation3], %s1191_s1, %s1191_s1, %s1192_s9  }
  0x24   :  { %s1193_s12 = smov [#allocation7]   ;;  %s1137_s16 = scalar_lea.hbm %s1433_s2, 128 }
  0x25   :  { %s41_s13 = sshll.u32 %s1193_s12, 4  ;;  %p1138_p2 = scmp.ne.s32.totalorder %s1433_s2, %s1137_s16  ;;  %s42_s13 = int_to_ptr.vmem [resolvable:$true] %s41_s13 }
  0x26   :  { %p1141_p3 = scmp.lt.u32.totalorder %s1137_s16, %s1433_s2 }
  0x28   :  { %p1143_p4 = pnand %p1141_p3, %p1138_p2 }
  0x2a   :  { %1146 = shalt.err (!%p1143_p4)
}
  0x2b   :  { %s1147_s21 = scalar_lea.vmem %s42_s13, 128  ;;  %p1152_p6 = scmp.lt.s32.totalorder %s42_s13, %s42_s13 }
  0x2c   :  { %p1148_p5 = scmp.ne.s32.totalorder %s42_s13, %s1147_s21  ;;  %p1153_p7 = scmp.lt.s32.totalorder %s1147_s21, %s1147_s21 }
  0x2e   :  { %p1154_p8 = por %p1153_p7, %p1152_p6 }
  0x30   :  { %p1155_p9 = pnand %p1154_p8, %p1148_p5 }
  0x32   :  { %1158 = shalt.err (!%p1155_p9)
}
  0x33   :  { %44 = dma.hbm_to_vmem [thread:$0]  %s1433_s2, 128, %s42_s13, [#allocation6]  }
  0x34   :  { %1181 = dma.done.wait [#allocation3], 2048  }
  0x35   :  { %1182 = vsyncadd [#allocation3], 4294965248 }
  0x36   :  { %1183 = dma.done.wait [#allocation6], 3200  }
  0x37   :  { %1184 = vsyncadd [#allocation6], 4294964096  ;;  %v1065_v0 = vld [vmem:[#allocation5] sm:$0xff]   ;;  %v1066_v1 = vld [vmem:[#allocation5 + $0x8] sm:$0xff]   ;;  %s1194_s2 = smov [#allocation8]  }
  0x38   :  { %945 = vmatprep.subr.bf16.mxu0 %v1065_v0  ;;  %v1067_v2 = vld [vmem:[#allocation5 + $0x10] sm:$0xff]   ;;  %v1068_v3 = vld [vmem:[#allocation5 + $0x18] sm:$0xff]   ;;  %v60_v4 = vld [vmem:[#allocation2] sm:$0xff]  ;;  %s859_s23 = sshll.u32 %s1194_s2, 4  ;;  %s860_s23 = int_to_ptr.vmem [resolvable:$true] %s859_s23 }
  0x39   :  { %946 = vmatpush3.bf16.msra.mxu0 %v1065_v0  ;;  %v61_v5 = vld [vmem:[#allocation2 + $0x8] sm:$0xff]  ;;  %v1069_v7 = vld [vmem:[#allocation5 + $0x20] sm:$0xff]   ;;  %v1071_v9 = vld [vmem:[#allocation5 + $0x30] sm:$0xff]   ;;  %s1159_s24 = scalar_lea.vmem %s860_s23, 2048  ;;  %p1164_p11 = scmp.lt.s32.totalorder %s860_s23, %s860_s23 }
  0x3a   :  { %947 = vmatprep.subr.bf16.mxu0 %v1066_v1  ;;  %v76_v6 = vpack.c.bf16 %v61_v5, %v60_v4  ;;  %v1070_v8 = vld [vmem:[#allocation5 + $0x28] sm:$0xff]   ;;  %v1072_v10 = vld [vmem:[#allocation5 + $0x38] sm:$0xff]   ;;  %v62_v11 = vld [vmem:[#allocation2 + $0x10] sm:$0xff]  ;;  %p1160_p10 = scmp.ne.s32.totalorder %s860_s23, %s1159_s24  ;;  %p1165_p12 = scmp.lt.s32.totalorder %s1159_s24, %s1159_s24 }
  0x3b   :  { %v63_v12 = vld [vmem:[#allocation2 + $0x18] sm:$0xff]  ;;  %v64_v13 = vld [vmem:[#allocation2 + $0x20] sm:$0xff]  ;;  %v65_v14 = vld [vmem:[#allocation2 + $0x28] sm:$0xff] }
  0x3c   :  { %961 = vmatprep.mubr.bf16.mxu0 %v76_v6  ;;  %v77_v15 = vpack.c.bf16 %v63_v12, %v62_v11  ;;  %v78_v16 = vpack.c.bf16 %v65_v14, %v64_v13  ;;  %v66_v17 = vld [vmem:[#allocation2 + $0x30] sm:$0xff]  ;;  %v67_v18 = vld [vmem:[#allocation2 + $0x38] sm:$0xff]  ;;  %v68_v19 = vld [vmem:[#allocation2 + $0x40] sm:$0xff]  ;;  %p1166_p13 = por %p1165_p12, %p1164_p11 }
  0x3d   :  { %948 = vmatpush3.bf16.msra.mxu0 %v1066_v1  ;;  %v69_v20 = vld [vmem:[#allocation2 + $0x48] sm:$0xff]  ;;  %v79_v21 = vpack.c.bf16 %v67_v18, %v66_v17  ;;  %v70_v23 = vld [vmem:[#allocation2 + $0x50] sm:$0xff]  ;;  %v71_v24 = vld [vmem:[#allocation2 + $0x58] sm:$0xff] }
  0x3e   :  { %949 = vmatprep.subr.bf16.mxu0 %v1067_v2  ;;  %v80_v22 = vpack.c.bf16 %v69_v20, %v68_v19  ;;  %v72_v25 = vld [vmem:[#allocation2 + $0x60] sm:$0xff]  ;;  %v73_v26 = vld [vmem:[#allocation2 + $0x68] sm:$0xff]  ;;  %v81_v27 = vpack.c.bf16 %v71_v24, %v70_v23  ;;  %v74_v29 = vld [vmem:[#allocation2 + $0x70] sm:$0xff]  ;;  %p1167_p0 = pnand %p1166_p13, %p1160_p10 }
  0x3f   :  { %v82_v28 = vpack.c.bf16 %v73_v26, %v72_v25  ;;  %v75_v30 = vld [vmem:[#allocation2 + $0x78] sm:$0xff]  ;;  %v1073_v32 = vld [vmem:[#allocation5 + $0x40] sm:$0xff]   ;;  %v1074_v33 = vld [vmem:[#allocation5 + $0x48] sm:$0xff]  }
  0x40   :  { %v83_v31 = vpack.c.bf16 %v75_v30, %v74_v29  ;;  %977 = vmatprep.subr.bf16.mxu1 %v1073_v32  ;;  %v1075_v34 = vld [vmem:[#allocation5 + $0x50] sm:$0xff]   ;;  %v1076_v35 = vld [vmem:[#allocation5 + $0x58] sm:$0xff]   ;;  %v1077_v36 = vld [vmem:[#allocation5 + $0x60] sm:$0xff]  }
  0x41   :  { %950 = vmatpush3.bf16.msra.mxu0 %v1067_v2  ;;  %978 = vmatpush3.bf16.msra.mxu1 %v1073_v32  ;;  %v1078_v37 = vld [vmem:[#allocation5 + $0x68] sm:$0xff]   ;;  %v1079_v38 = vld [vmem:[#allocation5 + $0x70] sm:$0xff]   ;;  %v1080_v39 = vld [vmem:[#allocation5 + $0x78] sm:$0xff]  }
  0x42   :  { %951 = vmatprep.subr.bf16.mxu0 %v1068_v3  ;;  %979 = vmatprep.subr.bf16.mxu1 %v1074_v33 }
  0x45   :  { %952 = vmatpush3.bf16.msra.mxu0 %v1068_v3  ;;  %980 = vmatpush3.bf16.msra.mxu1 %v1074_v33 }
  0x46   :  { %953 = vmatprep.subr.bf16.mxu0 %v1069_v7  ;;  %981 = vmatprep.subr.bf16.mxu1 %v1075_v34 }
  0x49   :  { %954 = vmatpush3.bf16.msra.mxu0 %v1069_v7  ;;  %982 = vmatpush3.bf16.msra.mxu1 %v1075_v34 }
  0x4a   :  { %955 = vmatprep.subr.bf16.mxu0 %v1070_v8  ;;  %983 = vmatprep.subr.bf16.mxu1 %v1076_v35 }
  0x4d   :  { %956 = vmatpush3.bf16.msra.mxu0 %v1070_v8  ;;  %984 = vmatpush3.bf16.msra.mxu1 %v1076_v35 }
  0x4e   :  { %957 = vmatprep.subr.bf16.mxu0 %v1071_v9  ;;  %985 = vmatprep.subr.bf16.mxu1 %v1077_v36 }
  0x51   :  { %958 = vmatpush3.bf16.msra.mxu0 %v1071_v9  ;;  %986 = vmatpush3.bf16.msra.mxu1 %v1077_v36 }
  0x52   :  { %959 = vmatprep.subr.bf16.mxu0 %v1072_v10  ;;  %987 = vmatprep.subr.bf16.mxu1 %v1078_v37 }
  0x55   :  { %960 = vmatpush3.bf16.msra.mxu0 %v1072_v10  ;;  %988 = vmatpush3.bf16.msra.mxu1 %v1078_v37 }
  0x56   :  { %989 = vmatprep.subr.bf16.mxu1 %v1079_v38 }
  0x58   :  { %962 = vmatmul.mubr.bf16.vlgmr.msra.gmra.mrb[0].mxu0 %v77_v15 }
  0x59   :  { %965 = vmatprep.mubr.bf16.mxu0 %v78_v16  ;;  %990 = vmatpush3.bf16.msra.mxu1 %v1079_v38 }
  0x5a   :  { %991 = vmatprep.subr.bf16.mxu1 %v1080_v39 }
  0x5d   :  { %992 = vmatpush3.bf16.msra.mxu1 %v1080_v39 }
  0x60   :  { %966 = vmatmul.mubr.bf16.gmra.mrb[4].mxu0 %v79_v21 }
  0x61   :  { %969 = vmatprep.mubr.bf16.mxu0 %v80_v22 }
  0x68   :  { %970 = vmatmul.mubr.bf16.gmra.mrb[8].mxu0 %v81_v27 }
  0x69   :  { %973 = vmatprep.mubr.bf16.mxu0 %v82_v28 }
  0x70   :  { %974 = vmatmul.mubr.bf16.gmra.mrb[12].mxu0 %v83_v31 }
 0x12b   :  { %v1254_v40 = vpop.f32.mrb[0].mxu0 }
 0x12c   :  { %v1256_v41 = vpop.f32.mrb[1].mxu0  ;;  %v270_v47 = vmul.f32 %v1254_v40, %v1254_v40 }
 0x12d   :  { %v1258_v42 = vpop.f32.mrb[2].mxu0  ;;  %v268_v44 = vmul.f32 %v1256_v41, %v1256_v41 }
 0x12e   :  { %v1260_v43 = vpop.f32.mrb[3].mxu0  ;;  %v271_v50 = vmul.f32 %v1258_v42, %v1258_v42 }
 0x12f   :  { %v245_v45 = vadd.f32 %v1260_v43, %v1256_v41  ;;  %v269_v46 = vmul.f32 %v1260_v43, %v1260_v43 }
 0x131   :  { %v246_v48 = vadd.f32 %v1254_v40, %v245_v45  ;;  %v284_v49 = vadd.f32 %v269_v46, %v268_v44 }
 0x133   :  { %v285_v51 = vadd.f32 %v284_v49, %v270_v47  ;;  %v1273_v52 = vpop.f32.mrb[4].mxu0  ;;  %v247_v53 = vadd.f32 %v1258_v42, %v246_v48 }
 0x134   :  { %v1276_v54 = vpop.f32.mrb[5].mxu0  ;;  %v274_v63 = vmul.f32 %v1273_v52, %v1273_v52 }
 0x135   :  { %v248_v55 = vadd.f32 %v247_v53, %v1276_v54  ;;  %v272_v56 = vmul.f32 %v1276_v54, %v1276_v54  ;;  %v286_v57 = vadd.f32 %v285_v51, %v271_v50  ;;  %v1281_v58 = vpop.f32.mrb[6].mxu0 }
 0x136   :  { %v1283_v59 = vpop.f32.mrb[7].mxu0  ;;  %v275_v2 = vmul.f32 %v1281_v58, %v1281_v58 }
 0x137   :  { %v287_v60 = vadd.f32 %v286_v57, %v272_v56  ;;  %v249_v61 = vadd.f32 %v248_v55, %v1283_v59  ;;  %v273_v62 = vmul.f32 %v1283_v59, %v1283_v59 }
 0x139   :  { %v250_v0 = vadd.f32 %v1273_v52, %v249_v61  ;;  %v288_v1 = vadd.f32 %v287_v60, %v273_v62 }
 0x13b   :  { %v289_v3 = vadd.f32 %v288_v1, %v274_v63  ;;  %v1293_v4 = vpop.f32.mrb[8].mxu0  ;;  %v251_v5 = vadd.f32 %v1281_v58, %v250_v0  ;;  %v314_v0 = vlaneseq }
 0x13c   :  { %v1296_v6 = vpop.f32.mrb[9].mxu0  ;;  %v278_v15 = vmul.f32 %v1293_v4, %v1293_v4 }
 0x13d   :  { %v252_v7 = vadd.f32 %v251_v5, %v1296_v6  ;;  %v276_v8 = vmul.f32 %v1296_v6, %v1296_v6  ;;  %v290_v9 = vadd.f32 %v289_v3, %v275_v2  ;;  %v1301_v10 = vpop.f32.mrb[10].mxu0  ;;  %v315_v1 = vshrl.u32 %v314_v0, 7  ;;  %v55_v2 = vld [vmem:[#allocation7] sm:$0x1] }
 0x13e   :  { %v1303_v11 = vpop.f32.mrb[11].mxu0  ;;  %v279_v18 = vmul.f32 %v1301_v10, %v1301_v10 }
 0x13f   :  { %v291_v12 = vadd.f32 %v290_v9, %v276_v8  ;;  %v253_v13 = vadd.f32 %v252_v7, %v1303_v11  ;;  %v277_v14 = vmul.f32 %v1303_v11, %v1303_v11  ;;  %v1324_v3 = vsub.s32 0, %v315_v1  ;;  %v56_v8 = vld [vmem:[#allocation7 + $0x1] sm:$0x1] }
 0x141   :  { %v254_v16 = vadd.f32 %v1293_v4, %v253_v13  ;;  %v292_v17 = vadd.f32 %v291_v12, %v277_v14 }
 0x143   :  { %v293_v19 = vadd.f32 %v292_v17, %v278_v15  ;;  %v1313_v20 = vpop.f32.mrb[12].mxu0  ;;  %v255_v21 = vadd.f32 %v1301_v10, %v254_v16 }
 0x144   :  { %v230_v22 = vpop.f32.mrb[13].mxu0  ;;  %v282_v31 = vmul.f32 %v1313_v20, %v1313_v20 }
 0x145   :  { %v256_v23 = vadd.f32 %v255_v21, %v230_v22  ;;  %v280_v24 = vmul.f32 %v230_v22, %v230_v22  ;;  %v294_v25 = vadd.f32 %v293_v19, %v279_v18  ;;  %v1316_v26 = vpop.f32.mrb[14].mxu0 }
 0x146   :  { %v233_v27 = vpop.f32.mrb[15].mxu0  ;;  %v283_v34 = vmul.f32 %v1316_v26, %v1316_v26 }
 0x147   :  { %v295_v28 = vadd.f32 %v294_v25, %v280_v24  ;;  %v257_v29 = vadd.f32 %v256_v23, %v233_v27  ;;  %v281_v30 = vmul.f32 %v233_v27, %v233_v27 }
 0x149   :  { %v258_v32 = vadd.f32 %v1313_v20, %v257_v29  ;;  %v296_v33 = vadd.f32 %v295_v28, %v281_v30 }
 0x14b   :  { %v259_v35 = vadd.f32 %v1316_v26, %v258_v32  ;;  %v297_v36 = vadd.f32 %v296_v33, %v282_v31 }
 0x14d   :  { %v260_v37 = vrot.slane %v259_v35, 4  ;;  %v298_v38 = vadd.f32 %v297_v36, %v283_v34 }
 0x14f   :  { %v261_v39 = vadd.f32 %v260_v37, %v259_v35  ;;  %v299_v44 = vrot.slane %v298_v38, 4 }
 0x151   :  { %v262_v45 = vrot.slane %v261_v39, 2  ;;  %v300_v46 = vadd.f32 %v299_v44, %v298_v38 }
 0x153   :  { %v263_v47 = vadd.f32 %v262_v45, %v261_v39  ;;  %v301_v48 = vrot.slane %v300_v46, 2 }
 0x155   :  { %v264_v49 = vrot.slane %v263_v47, 1  ;;  %v302_v50 = vadd.f32 %v301_v48, %v300_v46 }
 0x157   :  { %v265_v51 = vadd.f32 %v264_v49, %v263_v47  ;;  %v303_v53 = vrot.slane %v302_v50, 1 }
 0x159   :  { %v267_v55 = vmul.f32 0.0078125, %v265_v51  ;;  %v304_v56 = vadd.f32 %v303_v53, %v302_v50 }
 0x15b   :  { %v305_v57 = vmul.f32 0.0078125, %v304_v56  ;;  %v306_v60 = vmul.f32 %v267_v55, %v267_v55 }
 0x15d   :  { %v307_v61 = vsub.f32 %v305_v57, %v306_v60 }
 0x15f   :  { %v308_v62 = vmax.f32 %v307_v61, 0.0 }
 0x161   :  { %v309_v63 = vadd.f32 1e-05, %v308_v62 }
 0x163   :  { %1089 = vrsqrt.f32 %v309_v63 }
 0x16d   :  { %v1090_v5 = vpop.eup %1089 }
 0x16e   :  { %v311_v7 = vmul.f32 %v1090_v5, %v55_v2 }
 0x170   :  { %v312_v9 = vmul.f32 %v311_v7, %v267_v55  ;;  %v317_v12 = vrot.slane %v311_v7, %v1324_v3 }
 0x172   :  { %v313_v13 = vsub.f32 %v56_v8, %v312_v9  ;;  %v331_v14 = vmul.f32 %v317_v12, %v233_v27  ;;  %v318_v15 = vmul.f32 %v317_v12, %v1256_v41  ;;  %v319_v16 = vmul.f32 %v317_v12, %v1260_v43  ;;  %v1081_v8 = vld [vmem:[#allocation5 + $0x80] sm:$0xff]   ;;  %v1084_v9 = vld [vmem:[#allocation5 + $0x98] sm:$0xff]  }
 0x173   :  { %v320_v17 = vmul.f32 %v1254_v40, %v317_v12  ;;  %v321_v18 = vmul.f32 %v1258_v42, %v317_v12  ;;  %v322_v19 = vmul.f32 %v317_v12, %v1276_v54  ;;  %v323_v21 = vmul.f32 %v317_v12, %v1283_v59  ;;  %1009 = vmatprep.subr.bf16.mxu0 %v1081_v8 }
 0x174   :  { %v337_v23 = vrot.slane %v313_v13, %v1324_v3  ;;  %v324_v24 = vmul.f32 %v1273_v52, %v317_v12  ;;  %v325_v25 = vmul.f32 %v1281_v58, %v317_v12  ;;  %v326_v27 = vmul.f32 %v317_v12, %v1296_v6  ;;  %1041 = vmatprep.subr.bf16.mxu1 %v1081_v8  ;;  %v1086_v13 = vld [vmem:[#allocation5 + $0xa8] sm:$0xff]  }
 0x175   :  { %v327_v41 = vmul.f32 %v317_v12, %v1303_v11  ;;  %v328_v43 = vmul.f32 %v1293_v4, %v317_v12  ;;  %v329_v40 = vmul.f32 %v1301_v10, %v317_v12  ;;  %v330_v28 = vmul.f32 %v317_v12, %v230_v22  ;;  %1010 = vmatpush3.bf16.msra.mxu0 %v1081_v8 }
 0x176   :  { %v351_v42 = vadd.f32 %v337_v23, %v331_v14  ;;  %v338_v29 = vadd.f32 %v337_v23, %v318_v15  ;;  %v339_v54 = vadd.f32 %v337_v23, %v319_v16  ;;  %v340_v30 = vadd.f32 %v337_v23, %v320_v17  ;;  %v1087_v14 = vld [vmem:[#allocation5 + $0xb0] sm:$0xff]   ;;  %v1088_v15 = vld [vmem:[#allocation5 + $0xb8] sm:$0xff]  }
 0x177   :  { %v341_v59 = vadd.f32 %v337_v23, %v321_v18  ;;  %v342_v31 = vadd.f32 %v337_v23, %v322_v19  ;;  %v343_v32 = vadd.f32 %v337_v23, %v323_v21  ;;  %v344_v33 = vadd.f32 %v337_v23, %v324_v24 }
 0x178   :  { %v354_v52 = vmax.f32 %v338_v29, 0.0  ;;  %v355_v34 = vmax.f32 %v339_v54, 0.0  ;;  %v356_v58 = vmax.f32 %v340_v30, 0.0  ;;  %v345_v35 = vadd.f32 %v337_v23, %v325_v25 }
 0x179   :  { %v357_v6 = vmax.f32 %v341_v59, 0.0  ;;  %v358_v36 = vmax.f32 %v342_v31, 0.0  ;;  %v359_v11 = vmax.f32 %v343_v32, 0.0  ;;  %v360_v37 = vmax.f32 %v344_v33, 0.0 }
 0x17a   :  { %v370_v4 = vpack.c.bf16 %v355_v34, %v354_v52  ;;  %v361_v38 = vmax.f32 %v345_v35, 0.0  ;;  %v346_v10 = vadd.f32 %v337_v23, %v326_v27  ;;  %v347_v22 = vadd.f32 %v337_v23, %v327_v41 }
 0x17b   :  { %v371_v39 = vpack.c.bf16 %v357_v6, %v356_v58  ;;  %v372_v44 = vpack.c.bf16 %v359_v11, %v358_v36  ;;  %v348_v45 = vadd.f32 %v337_v23, %v328_v43  ;;  %v349_v46 = vadd.f32 %v337_v23, %v329_v40 }
 0x17c   :  { %993 = vmatprep.mubr.bf16.mxu1 %v370_v4  ;;  %v373_v47 = vpack.c.bf16 %v361_v38, %v360_v37  ;;  %v362_v48 = vmax.f32 %v346_v10, 0.0  ;;  %v363_v49 = vmax.f32 %v347_v22, 0.0  ;;  %v350_v50 = vadd.f32 %v337_v23, %v330_v28 }
 0x17d   :  { %994 = vmatmul.mubr.bf16.vlgmr.msra.gmra.mrb[0].mxu1 %v371_v39  ;;  %v364_v51 = vmax.f32 %v348_v45, 0.0  ;;  %v365_v53 = vmax.f32 %v349_v46, 0.0  ;;  %v367_v55 = vmax.f32 %v351_v42, 0.0  ;;  %v332_v56 = vmul.f32 %v1313_v20, %v317_v12  ;;  %v1082_v20 = vld [vmem:[#allocation5 + $0x88] sm:$0xff]  }
 0x17e   :  { %997 = vmatprep.mubr.bf16.mxu1 %v372_v44  ;;  %v374_v57 = vpack.c.bf16 %v363_v49, %v362_v48  ;;  %v366_v60 = vmax.f32 %v350_v50, 0.0  ;;  %v333_v61 = vmul.f32 %v1316_v26, %v317_v12  ;;  %1049 = vmatpush3.bf16.msra.mxu1 %v1081_v8  ;;  %v1083_v26 = vld [vmem:[#allocation5 + $0x90] sm:$0xff]   ;;  %v1085_v12 = vld [vmem:[#allocation5 + $0xa0] sm:$0xff]  }
 0x17f   :  { %v375_v62 = vpack.c.bf16 %v365_v53, %v364_v51  ;;  %v352_v63 = vadd.f32 %v337_v23, %v332_v56  ;;  %1011 = vmatprep.subr.bf16.mxu0 %v1082_v20  ;;  %1042 = vmatprep.subr.bf16.mxu1 %v1082_v20 }
 0x180   :  { %v376_v0 = vpack.c.bf16 %v367_v55, %v366_v60  ;;  %v353_v1 = vadd.f32 %v337_v23, %v333_v61  ;;  %1012 = vmatpush3.bf16.msra.mxu0 %v1082_v20 }
 0x181   :  { %v368_v2 = vmax.f32 %v352_v63, 0.0  ;;  %1013 = vmatprep.subr.bf16.mxu0 %v1083_v26 }
 0x182   :  { %v369_v5 = vmax.f32 %v353_v1, 0.0  ;;  %1050 = vmatpush3.bf16.msra.mxu1 %v1082_v20 }
 0x183   :  { %1043 = vmatprep.subr.bf16.mxu1 %v1083_v26 }
 0x184   :  { %v377_v7 = vpack.c.bf16 %v369_v5, %v368_v2  ;;  %1014 = vmatpush3.bf16.msra.mxu0 %v1083_v26 }
 0x185   :  { %998 = vmatmul.mubr.bf16.gmra.mrb[4].mxu1 %v373_v47  ;;  %1015 = vmatprep.subr.bf16.mxu0 %v1084_v9 }
 0x186   :  { %1001 = vmatprep.mubr.bf16.mxu1 %v374_v57  ;;  %1051 = vmatpush3.bf16.msra.mxu1 %v1083_v26 }
 0x187   :  { %1044 = vmatprep.subr.bf16.mxu1 %v1084_v9 }
 0x188   :  { %1016 = vmatpush3.bf16.msra.mxu0 %v1084_v9 }
 0x189   :  { %1017 = vmatprep.subr.bf16.mxu0 %v1085_v12 }
 0x18a   :  { %1052 = vmatpush3.bf16.msra.mxu1 %v1084_v9 }
 0x18b   :  { %1045 = vmatprep.subr.bf16.mxu1 %v1085_v12 }
 0x18c   :  { %1018 = vmatpush3.bf16.msra.mxu0 %v1085_v12 }
 0x18d   :  { %1002 = vmatmul.mubr.bf16.gmra.mrb[8].mxu1 %v375_v62  ;;  %1019 = vmatprep.subr.bf16.mxu0 %v1086_v13 }
 0x18e   :  { %1005 = vmatprep.mubr.bf16.mxu1 %v376_v0  ;;  %1053 = vmatpush3.bf16.msra.mxu1 %v1085_v12 }
 0x18f   :  { %1046 = vmatprep.subr.bf16.mxu1 %v1086_v13 }
 0x190   :  { %1020 = vmatpush3.bf16.msra.mxu0 %v1086_v13 }
 0x191   :  { %1021 = vmatprep.subr.bf16.mxu0 %v1087_v14 }
 0x192   :  { %1054 = vmatpush3.bf16.msra.mxu1 %v1086_v13 }
 0x193   :  { %1047 = vmatprep.subr.bf16.mxu1 %v1087_v14 }
 0x194   :  { %1022 = vmatpush3.bf16.msra.mxu0 %v1087_v14 }
 0x195   :  { %1006 = vmatmul.mubr.bf16.gmra.mrb[12].mxu1 %v377_v7  ;;  %1023 = vmatprep.subr.bf16.mxu0 %v1088_v15 }
 0x196   :  { %1055 = vmatpush3.bf16.msra.mxu1 %v1087_v14 }
 0x197   :  { %1048 = vmatprep.subr.bf16.mxu1 %v1088_v15 }
 0x198   :  { %1024 = vmatpush3.bf16.msra.mxu0 %v1088_v15 }
 0x19a   :  { %1056 = vmatpush3.bf16.msra.mxu1 %v1088_v15 }
 0x250   :  { %v1342_v16 = vpop.f32.mrb[0].mxu1 }
 0x251   :  { %v1344_v17 = vpop.f32.mrb[1].mxu1  ;;  %v564_v25 = vmul.f32 %v1342_v16, %v1342_v16 }
 0x252   :  { %v1346_v18 = vpop.f32.mrb[2].mxu1  ;;  %v562_v21 = vmul.f32 %v1344_v17, %v1344_v17 }
 0x253   :  { %v1348_v19 = vpop.f32.mrb[3].mxu1  ;;  %v565_v43 = vmul.f32 %v1346_v18, %v1346_v18 }
 0x254   :  { %v540_v23 = vadd.f32 %v1348_v19, %v1344_v17  ;;  %v563_v24 = vmul.f32 %v1348_v19, %v1348_v19 }
 0x256   :  { %v541_v27 = vadd.f32 %v1342_v16, %v540_v23  ;;  %v578_v41 = vadd.f32 %v563_v24, %v562_v21 }
 0x258   :  { %v579_v40 = vadd.f32 %v578_v41, %v564_v25  ;;  %v1361_v28 = vpop.f32.mrb[4].mxu1  ;;  %v542_v42 = vadd.f32 %v1346_v18, %v541_v27 }
 0x259   :  { %v1364_v29 = vpop.f32.mrb[5].mxu1  ;;  %v568_v58 = vmul.f32 %v1361_v28, %v1361_v28 }
 0x25a   :  { %v543_v54 = vadd.f32 %v542_v42, %v1364_v29  ;;  %v566_v30 = vmul.f32 %v1364_v29, %v1364_v29  ;;  %v580_v59 = vadd.f32 %v579_v40, %v565_v43  ;;  %v1369_v31 = vpop.f32.mrb[6].mxu1 }
 0x25b   :  { %v1371_v32 = vpop.f32.mrb[7].mxu1  ;;  %v569_v36 = vmul.f32 %v1369_v31, %v1369_v31 }
 0x25c   :  { %v581_v33 = vadd.f32 %v580_v59, %v566_v30  ;;  %v544_v52 = vadd.f32 %v543_v54, %v1371_v32  ;;  %v567_v34 = vmul.f32 %v1371_v32, %v1371_v32 }
 0x25e   :  { %v545_v35 = vadd.f32 %v1361_v28, %v544_v52  ;;  %v582_v6 = vadd.f32 %v581_v33, %v567_v34 }
 0x260   :  { %v583_v11 = vadd.f32 %v582_v6, %v568_v58  ;;  %v1381_v37 = vpop.f32.mrb[8].mxu1  ;;  %v546_v4 = vadd.f32 %v1369_v31, %v545_v35  ;;  %v57_v6 = vld [vmem:[#allocation7 + $0x2] sm:$0x1] }
 0x261   :  { %v509_v38 = vpop.f32.mrb[9].mxu1  ;;  %v572_v49 = vmul.f32 %v1381_v37, %v1381_v37 }
 0x262   :  { %v547_v10 = vadd.f32 %v546_v4, %v509_v38  ;;  %v570_v22 = vmul.f32 %v509_v38, %v509_v38  ;;  %v584_v39 = vadd.f32 %v583_v11, %v569_v36  ;;  %v1384_v44 = vpop.f32.mrb[10].mxu1  ;;  %v58_v4 = vld [vmem:[#allocation7 + $0x3] sm:$0x1] }
 0x263   :  { %v512_v45 = vpop.f32.mrb[11].mxu1  ;;  %v573_v53 = vmul.f32 %v1384_v44, %v1384_v44 }
 0x264   :  { %v585_v46 = vadd.f32 %v584_v39, %v570_v22  ;;  %v548_v47 = vadd.f32 %v547_v10, %v512_v45  ;;  %v571_v48 = vmul.f32 %v512_v45, %v512_v45 }
 0x266   :  { %v549_v50 = vadd.f32 %v1381_v37, %v548_v47  ;;  %v586_v51 = vadd.f32 %v585_v46, %v571_v48 }
 0x268   :  { %v587_v55 = vadd.f32 %v586_v51, %v572_v49  ;;  %v1391_v56 = vpop.f32.mrb[12].mxu1  ;;  %v550_v57 = vadd.f32 %v1384_v44, %v549_v50 }
 0x269   :  { %v525_v60 = vpop.f32.mrb[13].mxu1  ;;  %v576_v8 = vmul.f32 %v1391_v56, %v1391_v56 }
 0x26a   :  { %v551_v61 = vadd.f32 %v550_v57, %v525_v60  ;;  %v574_v62 = vmul.f32 %v525_v60, %v525_v60  ;;  %v588_v63 = vadd.f32 %v587_v55, %v573_v53  ;;  %v1394_v0 = vpop.f32.mrb[14].mxu1 }
 0x26b   :  { %v528_v1 = vpop.f32.mrb[15].mxu1  ;;  %v577_v9 = vmul.f32 %v1394_v0, %v1394_v0 }
 0x26c   :  { %v589_v2 = vadd.f32 %v588_v63, %v574_v62  ;;  %v552_v5 = vadd.f32 %v551_v61, %v528_v1  ;;  %v575_v7 = vmul.f32 %v528_v1, %v528_v1 }
 0x26e   :  { %v553_v20 = vadd.f32 %v1391_v56, %v552_v5  ;;  %v590_v26 = vadd.f32 %v589_v2, %v575_v7 }
 0x270   :  { %v554_v12 = vadd.f32 %v1394_v0, %v553_v20  ;;  %v591_v13 = vadd.f32 %v590_v26, %v576_v8 }
 0x272   :  { %v555_v14 = vrot.slane %v554_v12, 4  ;;  %v592_v15 = vadd.f32 %v591_v13, %v577_v9 }
 0x274   :  { %v556_v21 = vadd.f32 %v555_v14, %v554_v12  ;;  %v593_v23 = vrot.slane %v592_v15, 4 }
 0x276   :  { %v557_v24 = vrot.slane %v556_v21, 2  ;;  %v594_v25 = vadd.f32 %v593_v23, %v592_v15 }
 0x278   :  { %v558_v27 = vadd.f32 %v557_v24, %v556_v21  ;;  %v595_v41 = vrot.slane %v594_v25, 2 }
 0x27a   :  { %v559_v43 = vrot.slane %v558_v27, 1  ;;  %v596_v40 = vadd.f32 %v595_v41, %v594_v25 }
 0x27c   :  { %v560_v42 = vadd.f32 %v559_v43, %v558_v27  ;;  %v597_v54 = vrot.slane %v596_v40, 1 }
 0x27e   :  { %v561_v30 = vmul.f32 0.0078125, %v560_v42  ;;  %v598_v59 = vadd.f32 %v597_v54, %v596_v40 }
 0x280   :  { %v599_v33 = vmul.f32 0.0078125, %v598_v59  ;;  %v600_v52 = vmul.f32 %v561_v30, %v561_v30 }
 0x282   :  { %v601_v34 = vsub.f32 %v599_v33, %v600_v52 }
 0x284   :  { %v602_v58 = vmax.f32 %v601_v34, 0.0 }
 0x286   :  { %v603_v35 = vadd.f32 1e-05, %v602_v58 }
 0x288   :  { %1091 = vrsqrt.f32 %v603_v35 }
 0x292   :  { %v1092_v36 = vpop.eup %1091 }
 0x293   :  { %v605_v11 = vmul.f32 %v1092_v36, %v57_v6 }
 0x295   :  { %v606_v10 = vmul.f32 %v605_v11, %v561_v30  ;;  %v611_v22 = vrot.slane %v605_v11, %v1324_v3  ;;  %v888_v11 = vld [vmem:[#allocation7 + $0x4] ss:$0 sm:$0xff] }
 0x297   :  { %v607_v39 = vsub.f32 %v58_v4, %v606_v10  ;;  %v625_v46 = vmul.f32 %v611_v22, %v528_v1  ;;  %v612_v47 = vmul.f32 %v611_v22, %v1344_v17  ;;  %v613_v48 = vmul.f32 %v611_v22, %v1348_v19 }
 0x298   :  { %v620_v49 = vmul.f32 %v611_v22, %v509_v38  ;;  %v621_v50 = vmul.f32 %v611_v22, %v512_v45  ;;  %v614_v51 = vmul.f32 %v1342_v16, %v611_v22  ;;  %v615_v53 = vmul.f32 %v1346_v18, %v611_v22 }
 0x299   :  { %v631_v55 = vrot.slane %v607_v39, %v1324_v3  ;;  %v622_v57 = vmul.f32 %v1381_v37, %v611_v22  ;;  %v623_v61 = vmul.f32 %v1384_v44, %v611_v22  ;;  %v616_v62 = vmul.f32 %v611_v22, %v1364_v29 }
 0x29a   :  { %v617_v63 = vmul.f32 %v611_v22, %v1371_v32  ;;  %v624_v1 = vmul.f32 %v611_v22, %v525_v60  ;;  %v618_v17 = vmul.f32 %v1361_v28, %v611_v22  ;;  %v619_v19 = vmul.f32 %v1369_v31, %v611_v22 }
 0x29b   :  { %v645_v38 = vadd.f32 %v631_v55, %v625_v46  ;;  %v632_v45 = vadd.f32 %v631_v55, %v612_v47  ;;  %v633_v16 = vadd.f32 %v631_v55, %v613_v48  ;;  %v640_v2 = vadd.f32 %v631_v55, %v620_v49 }
 0x29c   :  { %v641_v18 = vadd.f32 %v631_v55, %v621_v50  ;;  %v634_v5 = vadd.f32 %v631_v55, %v614_v51  ;;  %v635_v3 = vadd.f32 %v631_v55, %v615_v53  ;;  %v642_v7 = vadd.f32 %v631_v55, %v622_v57 }
 0x29d   :  { %v648_v37 = vmax.f32 %v632_v45, 0.0  ;;  %v649_v8 = vmax.f32 %v633_v16, 0.0  ;;  %v656_v44 = vmax.f32 %v640_v2, 0.0  ;;  %v643_v20 = vadd.f32 %v631_v55, %v623_v61 }
 0x29e   :  { %v657_v29 = vmax.f32 %v641_v18, 0.0  ;;  %v650_v26 = vmax.f32 %v634_v5, 0.0  ;;  %v651_v32 = vmax.f32 %v635_v3, 0.0  ;;  %v658_v60 = vmax.f32 %v642_v7, 0.0 }
 0x29f   :  { %v664_v9 = vpack.c.bf16 %v649_v8, %v648_v37  ;;  %v659_v28 = vmax.f32 %v643_v20, 0.0  ;;  %v636_v12 = vadd.f32 %v631_v55, %v616_v62  ;;  %v637_v31 = vadd.f32 %v631_v55, %v617_v63 }
 0x2a0   :  { %v668_v13 = vpack.c.bf16 %v657_v29, %v656_v44  ;;  %v665_v14 = vpack.c.bf16 %v651_v32, %v650_v26  ;;  %v644_v15 = vadd.f32 %v631_v55, %v624_v1  ;;  %v661_v21 = vmax.f32 %v645_v38, 0.0 }
 0x2a1   :  { %1025 = vmatprep.mubr.bf16.mxu0 %v664_v9  ;;  %v669_v23 = vpack.c.bf16 %v659_v28, %v658_v60  ;;  %v652_v24 = vmax.f32 %v636_v12, 0.0  ;;  %v653_v25 = vmax.f32 %v637_v31, 0.0  ;;  %v638_v27 = vadd.f32 %v631_v55, %v618_v17 }
 0x2a2   :  { %1033 = vmatprep.mubr.bf16.mxu1 %v668_v13  ;;  %1026 = vmatmul.mubr.bf16.vlgmr.msra.gmra.mrb[16].mxu0 %v665_v14  ;;  %v660_v41 = vmax.f32 %v644_v15, 0.0  ;;  %v639_v43 = vadd.f32 %v631_v55, %v619_v19  ;;  %v626_v40 = vmul.f32 %v1391_v56, %v611_v22  ;;  %v627_v42 = vmul.f32 %v1394_v0, %v611_v22 }
 0x2a3   :  { %1034 = vmatmul.mubr.bf16.vlgmr.msra.gmra.mrb[16].mxu1 %v669_v23  ;;  %v666_v54 = vpack.c.bf16 %v653_v25, %v652_v24  ;;  %v654_v30 = vmax.f32 %v638_v27, 0.0 }
 0x2a4   :  { %v670_v59 = vpack.c.bf16 %v661_v21, %v660_v41  ;;  %v655_v33 = vmax.f32 %v639_v43, 0.0  ;;  %v646_v52 = vadd.f32 %v631_v55, %v626_v40  ;;  %v647_v34 = vadd.f32 %v631_v55, %v627_v42 }
 0x2a5   :  { %1029 = vmatprep.mubr.bf16.mxu0 %v666_v54 }
 0x2a6   :  { %1037 = vmatprep.mubr.bf16.mxu1 %v670_v59  ;;  %v667_v58 = vpack.c.bf16 %v655_v33, %v654_v30  ;;  %v662_v35 = vmax.f32 %v646_v52, 0.0  ;;  %v663_v6 = vmax.f32 %v647_v34, 0.0 }
 0x2a8   :  { %v671_v36 = vpack.c.bf16 %v663_v6, %v662_v35 }
 0x2aa   :  { %1030 = vmatmul.mubr.bf16.gmra.mrb[20].mxu0 %v667_v58 }
 0x2ab   :  { %1038 = vmatmul.mubr.bf16.gmra.mrb[20].mxu1 %v671_v36 }
 0x375   :  { %v1027_v4 = vpop.f32.mrb[16].mxu0 }
 0x376   :  { %v784_v56 = vadd.f32 %v1027_v4, %v888_v11  ;;  %v1035_v10 = vpop.f32.mrb[16].mxu1  ;;  %v775_v0 = vpop.f32.mrb[17].mxu0 }
 0x377   :  { %v816_v22 = vadd.f32 %v1035_v10, %v888_v11  ;;  %v776_v39 = vadd.f32 %v888_v11, %v775_v0  ;;  %v807_v46 = vpop.f32.mrb[17].mxu1  ;;  %v1028_v47 = vpop.f32.mrb[18].mxu0 }
 0x378   :  { %840 = vst [vmem:[#allocation8 + $0x10] sm:$0xff] %v784_v56  ;;  %v808_v48 = vadd.f32 %v888_v11, %v807_v46  ;;  %v787_v49 = vadd.f32 %v1028_v47, %v888_v11  ;;  %v1036_v50 = vpop.f32.mrb[18].mxu1  ;;  %v778_v51 = vpop.f32.mrb[19].mxu0 }
 0x379   :  { %848 = vst [vmem:[#allocation8 + $0x50] sm:$0xff] %v816_v22  ;;  %838 = vst [vmem:[#allocation8] sm:$0xff] %v776_v39  ;;  %v819_v53 = vadd.f32 %v1036_v50, %v888_v11  ;;  %v779_v55 = vadd.f32 %v888_v11, %v778_v51  ;;  %v810_v57 = vpop.f32.mrb[19].mxu1 }
 0x37a   :  { %846 = vst [vmem:[#allocation8 + $0x40] sm:$0xff] %v808_v48  ;;  %841 = vst [vmem:[#allocation8 + $0x18] sm:$0xff] %v787_v49  ;;  %v811_v61 = vadd.f32 %v888_v11, %v810_v57 }
 0x37b   :  { %849 = vst [vmem:[#allocation8 + $0x58] sm:$0xff] %v819_v53  ;;  %839 = vst [vmem:[#allocation8 + $0x8] sm:$0xff] %v779_v55 }
 0x37c   :  { %847 = vst [vmem:[#allocation8 + $0x48] sm:$0xff] %v811_v61 }
 0x37d   :  { %v1031_v62 = vpop.f32.mrb[20].mxu0 }
 0x37e   :  { %v800_v63 = vadd.f32 %v1031_v62, %v888_v11  ;;  %v1039_v1 = vpop.f32.mrb[20].mxu1  ;;  %v791_v17 = vpop.f32.mrb[21].mxu0 }
 0x37f   :  { %v832_v19 = vadd.f32 %v1039_v1, %v888_v11  ;;  %v792_v38 = vadd.f32 %v888_v11, %v791_v17  ;;  %v823_v45 = vpop.f32.mrb[21].mxu1  ;;  %v1032_v16 = vpop.f32.mrb[22].mxu0 }
 0x380   :  { %844 = vst [vmem:[#allocation8 + $0x30] sm:$0xff] %v800_v63  ;;  %v824_v2 = vadd.f32 %v888_v11, %v823_v45  ;;  %v803_v18 = vadd.f32 %v1032_v16, %v888_v11  ;;  %v1040_v5 = vpop.f32.mrb[22].mxu1  ;;  %v794_v3 = vpop.f32.mrb[23].mxu0 }
 0x381   :  { %852 = vst [vmem:[#allocation8 + $0x70] sm:$0xff] %v832_v19  ;;  %842 = vst [vmem:[#allocation8 + $0x20] sm:$0xff] %v792_v38  ;;  %v835_v7 = vadd.f32 %v1040_v5, %v888_v11  ;;  %v795_v37 = vadd.f32 %v888_v11, %v794_v3  ;;  %v826_v8 = vpop.f32.mrb[23].mxu1 }
 0x382   :  { %850 = vst [vmem:[#allocation8 + $0x60] sm:$0xff] %v824_v2  ;;  %845 = vst [vmem:[#allocation8 + $0x38] sm:$0xff] %v803_v18  ;;  %v827_v44 = vadd.f32 %v888_v11, %v826_v8 }
 0x383   :  { %853 = vst [vmem:[#allocation8 + $0x78] sm:$0xff] %v835_v7  ;;  %843 = vst [vmem:[#allocation8 + $0x28] sm:$0xff] %v795_v37 }
 0x384   :  { %851 = vst [vmem:[#allocation8 + $0x68] sm:$0xff] %v827_v44 }
 0x385   :  { %1170 = shalt.err (!%p1167_p0)
}
 0x386   :  { %s1171_s27 = scalar_lea.hbm %s1434_s3, 2048 }
 0x387   :  { %p1172_p1 = scmp.ne.s32.totalorder %s1434_s3, %s1171_s27  ;;  %p1175_p2 = scmp.lt.u32.totalorder %s1171_s27, %s1434_s3 }
 0x389   :  { %p1177_p3 = pnand %p1175_p2, %p1172_p1 }
 0x38b   :  { %1180 = shalt.err (!%p1177_p3)
}
 0x38c   :  { %865 = dma.vmem_to_hbm [thread:$0]  %s860_s23, 2048, %s1434_s3, [#allocation4], %s1191_s1, %s1191_s1, %s1192_s9  }
 0x38d   :  { %1185 = dma.done.wait [#allocation4], 2048  }
 0x38e   :  { %1186 = vsyncadd [#allocation4], 4294965248 }
 0x38f   :  { %869 = vsyncpa [#allocation3], 1 }
 0x390   :  { %870 = vsyncpa [#allocation6], 1 }
 0x391   :  { %871 = vsyncpa [#allocation4], 1 }

</bundles_post_ra>
